<compile_context>
chip_gen: v7x
topology: tpu7x:2x2x1
jax: 0.10.0
libtpu: 0.0.40
codegen_flags: <defaults>
</compile_context>

<pallas_src>
import functools

import jax
import jax.numpy as jnp
from jax.experimental import pallas as pl
from jax.experimental.pallas import tpu as pltpu

_LANE = 128


def _bcfe_tile_kernel(x_ref, t_ref, out_ref,
                      cpos_ref, spos_ref, cneg_ref, sneg_ref,
                      *, tile_t, t_len, tiles_per_par, has_partial_tile):
    """Process one (R, tile_t) time-slab of logits/targets.

    Accumulates four per-row lane-wise partial sums (pos count, pos bce sum,
    neg count, neg bce sum) in VMEM scratch; writes the packed per-row
    reductions once, at the last time-tile of this parallel chunk.
    """
    p = pl.program_id(0)          # parallel chunk (splits the time axis)
    i = pl.program_id(1)          # time-tile index inside the chunk

    @pl.when(i == 0)
    def _init():
        cpos_ref[...] = jnp.zeros_like(cpos_ref)
        spos_ref[...] = jnp.zeros_like(spos_ref)
        cneg_ref[...] = jnp.zeros_like(cneg_ref)
        sneg_ref[...] = jnp.zeros_like(sneg_ref)

    rows = x_ref.shape[0]
    x = x_ref[...].astype(jnp.float32)
    t = t_ref[...].astype(jnp.float32)

    if has_partial_tile:
        # Global time offset of each lane of this tile -> validity mask for
        # the (possibly padded) edge tile.  Neutralize padded lanes: x=0
        # keeps bce finite, t=0.5 falls in neither the ==1 nor the ==0 mask.
        base = (p * tiles_per_par + i) * tile_t
        lane = jax.lax.broadcasted_iota(jnp.int32, (rows, tile_t), 1)
        valid = (base + lane) < t_len
        x = jnp.where(valid, x, 0.0)
        t = jnp.where(valid, t, 0.5)

    # Numerically stable binary_cross_entropy_with_logits:
    #   bce(x, y) = max(x, 0) - x*y + log1p(exp(-|x|))
    bce = jnp.maximum(x, 0.0) - x * t + jnp.log1p(jnp.exp(-jnp.abs(x)))

    # Exact PyTorch semantics: strict ==1 / ==0 masks (non-binary targets are
    # excluded from both, just like the reference module).
    posm = (t == 1.0).astype(jnp.float32)
    negm = (t == 0.0).astype(jnp.float32)

    def fold(v):
        # (rows, tile_t) -> (rows, 128): lane-aligned VALU-only partial sum
        # (no per-tile XLU cross-lane reduce).
        acc = v[:, 0:_LANE]
        for k in range(1, tile_t // _LANE):
            acc = acc + v[:, k * _LANE:(k + 1) * _LANE]
        return acc

    cpos_ref[...] += fold(posm)
    spos_ref[...] += fold(bce * posm)
    cneg_ref[...] += fold(negm)
    sneg_ref[...] += fold(bce * negm)

    @pl.when(i == pl.num_programs(1) - 1)
    def _finalize():
        # Single cross-lane (XLU) reduction per chunk; pack the four per-row
        # sums into one small output block.
        sums = jnp.concatenate(
            [jnp.sum(cpos_ref[...], axis=-1, keepdims=True),
             jnp.sum(spos_ref[...], axis=-1, keepdims=True),
             jnp.sum(cneg_ref[...], axis=-1, keepdims=True),
             jnp.sum(sneg_ref[...], axis=-1, keepdims=True)],
            axis=-1)                                    # (rows, 4)
        out_ref[...] = sums[None]                       # (1, rows, 4)


def bcfe_loss(inp, tgt, *, tile_t=None):
    """inp, tgt: (B, 2, T) arrays.  Returns (total, total_beat, total_downbeat)."""
    B, C, T = inp.shape
    if C != 2:
        raise ValueError("BCFELoss expects channel dim of size 2 (beat, downbeat)")
    R = B * C

    # Free, contiguous reshape (no transpose, no dtype copy in HBM):
    # row r = b*2 + c, so channel = r % 2.
    x = inp.reshape(R, T)
    t = tgt.reshape(R, T)

    # ---- tile-size selection -------------------------------------------
    if tile_t is None:
        tile_t = 2048
        bytes_per_elem = max(x.dtype.itemsize, t.dtype.itemsize)
        # Keep each (R, tile_t) input buffer <= ~1 MiB so 2 inputs x 2
        # pipeline buffers fit comfortably inside the scoped-VMEM default on
        # all chips (v5e/v6e/v7x).
        while tile_t > _LANE and R * tile_t * bytes_per_elem > (1 << 20):
            tile_t //= 2
    if tile_t % _LANE != 0:
        raise ValueError("tile_t must be a multiple of 128")
    t_rounded = ((T + _LANE - 1) // _LANE) * _LANE
    tile_t = min(tile_t, t_rounded)

    tiles_total = pl.cdiv(T, tile_t)
    # Split the time range across two parallel chunks (both TensorCores on
    # v7x); fall back to a single chunk if the tile count is not even.
    num_par = 2 if (tiles_total >= 2 and tiles_total % 2 == 0) else 1
    tiles_per_par = tiles_total // num_par
    has_partial_tile = (T % tile_t) != 0

    kernel = functools.partial(_bcfe_tile_kernel, tile_t=tile_t, t_len=T,
                               tiles_per_par=tiles_per_par,
                               has_partial_tile=has_partial_tile)

    partials = pl.pallas_call(
        kernel,
        out_shape=jax.ShapeDtypeStruct((num_par, R, 4), jnp.float32),
        grid=(num_par, tiles_per_par),
        in_specs=[
            pl.BlockSpec((R, tile_t), lambda p, i: (0, p * tiles_per_par + i)),
            pl.BlockSpec((R, tile_t), lambda p, i: (0, p * tiles_per_par + i)),
        ],
        out_specs=pl.BlockSpec((1, R, 4), lambda p, i: (p, 0, 0)),
        scratch_shapes=[pltpu.VMEM((R, _LANE), jnp.float32) for _ in range(4)],
        compiler_params=pltpu.CompilerParams(
            dimension_semantics=("parallel", "arbitrary")),
    )(x, t)

    # ---- tiny scalar glue in plain JAX ----------------------------------
    per_row = jnp.sum(partials, axis=0)                  # (R, 4)
    per_ch = jnp.sum(per_row.reshape(B, C, 4), axis=0)   # (2, 4)
    pos_cnt, pos_sum = per_ch[:, 0], per_ch[:, 1]
    neg_cnt, neg_sum = per_ch[:, 2], per_ch[:, 3]

    # NOTE: like the PyTorch module, this NaNs if a channel has no positives
    # (or no negatives) anywhere in the batch.
    pos_mean = pos_sum / pos_cnt      # [beat_loss, downbeat_loss]
    neg_mean = neg_sum / neg_cnt      # [no_beat_loss, no_downbeat_loss]

    total_per_ch = 0.5 * ((pos_mean + neg_mean) ** 2 + (pos_mean - neg_mean) ** 2)
    total_beat_loss = total_per_ch[0]
    total_downbeat_loss = total_per_ch[1]
    total_loss = total_beat_loss + total_downbeat_loss
    return total_loss, total_beat_loss, total_downbeat_loss


def _ref_bcfe_loss(inp, tgt):
    """Pure-JAX reference mirroring the PyTorch module semantics."""
    def masked_bce_mean(x, y, mask):
        l = jnp.maximum(x, 0.0) - x * y + jnp.log1p(jnp.exp(-jnp.abs(x)))
        return jnp.sum(jnp.where(mask, l, 0.0)) / jnp.sum(mask)

    bt, dt = tgt[:, 0, :], tgt[:, 1, :]
    bi, di = inp[:, 0, :], inp[:, 1, :]
    beat_loss = masked_bce_mean(bi, bt, bt == 1)
    no_beat_loss = masked_bce_mean(bi, bt, bt == 0)
    downbeat_loss = masked_bce_mean(di, dt, dt == 1)
    no_downbeat_loss = masked_bce_mean(di, dt, dt == 0)
    tb = 0.5 * ((beat_loss + no_beat_loss) ** 2 + (beat_loss - no_beat_loss) ** 2)
    td = 0.5 * ((downbeat_loss + no_downbeat_loss) ** 2 +
                (downbeat_loss - no_downbeat_loss) ** 2)
    return tb + td, tb, td


if __name__ == "__main__":
    key = jax.random.PRNGKey(0)
    k_in, k_beat, k_down = jax.random.split(key, 3)

    # Small but non-trivial: T is NOT a multiple of the tile, so the padded
    # edge-tile masking path is exercised; tile_t=512 gives 8 time tiles
    # split into 2 parallel chunks x 4 accumulation steps.
    B, T = 2, 4000
    inp = jax.random.normal(k_in, (B, 2, T), dtype=jnp.float32)        # logits
    beat_t = (jax.random.uniform(k_beat, (B, T)) < 0.25).astype(jnp.float32)
    down_t = (jax.random.uniform(k_down, (B, T)) < 0.10).astype(jnp.float32)
    tgt = jnp.stack([beat_t, down_t], axis=1)                          # (B, 2, T)

    loss_fn = jax.jit(functools.partial(bcfe_loss, tile_t=512))
    total, total_beat, total_down = jax.block_until_ready(loss_fn(inp, tgt))

    ref_total, ref_beat, ref_down = _ref_bcfe_loss(inp, tgt)
    assert jnp.allclose(total, ref_total, rtol=1e-4, atol=1e-6), (total, ref_total)
    assert jnp.allclose(total_beat, ref_beat, rtol=1e-4, atol=1e-6), (total_beat, ref_beat)
    assert jnp.allclose(total_down, ref_down, rtol=1e-4, atol=1e-6), (total_down, ref_down)

    print("KERNEL_OK")
</pallas_src>

<mosaic_0001>
module attributes {stable_mosaic.version = 11 : i64} {
  func.func @_bcfe_tile_kernel(%arg0: i32, %arg1: i32, %arg2: memref<4x512xf32, #tpu.memory_space<vmem>>, %arg3: memref<4x512xf32, #tpu.memory_space<vmem>>, %arg4: memref<1x4x4xf32, #tpu.memory_space<vmem>>, %arg5: memref<4x128xf32, #tpu.memory_space<vmem>>, %arg6: memref<4x128xf32, #tpu.memory_space<vmem>>, %arg7: memref<4x128xf32, #tpu.memory_space<vmem>>, %arg8: memref<4x128xf32, #tpu.memory_space<vmem>>) attributes {dimension_semantics = [#tpu.dimension_semantics<parallel>, #tpu.dimension_semantics<arbitrary>], iteration_bounds = array<i64: 2, 4>, scalar_prefetch = 0 : i64, scratch_operands = 4 : i64, tpu.core_type = #tpu.core_type<tc>, window_params = [{transform_indices = @transform_0, window_bounds = array<i64: 4, 512>}, {transform_indices = @transform_1, window_bounds = array<i64: 4, 512>}, {transform_indices = @transform_2, window_bounds = array<i64: 1, 4, 4>}]} {
    %c0_i32 = arith.constant 0 : i32
    %0 = arith.cmpi eq, %arg1, %c0_i32 : i32
    %1 = arith.extui %0 : i1 to i32
    %c0_i32_0 = arith.constant 0 : i32
    %2 = arith.cmpi ne, %1, %c0_i32_0 : i32
    scf.if %2 {
      %cst_26 = arith.constant 0.000000e+00 : f32
      %80 = vector.broadcast %cst_26 : f32 to vector<4x128xf32>
      %c0_27 = arith.constant 0 : index
      %c0_28 = arith.constant 0 : index
      %81 = vector.load %arg5[%c0_27, %c0_28] : memref<4x128xf32, #tpu.memory_space<vmem>>, vector<4x128xf32>
      tpu.vector_store %arg5[%c0_27, %c0_28], %80 {strides = array<i32>} : memref<4x128xf32, #tpu.memory_space<vmem>>, vector<4x128xf32>,
      %cst_29 = arith.constant 0.000000e+00 : f32
      %82 = vector.broadcast %cst_29 : f32 to vector<4x128xf32>
      %c0_30 = arith.constant 0 : index
      %c0_31 = arith.constant 0 : index
      %83 = vector.load %arg6[%c0_30, %c0_31] : memref<4x128xf32, #tpu.memory_space<vmem>>, vector<4x128xf32>
      tpu.vector_store %arg6[%c0_30, %c0_31], %82 {strides = array<i32>} : memref<4x128xf32, #tpu.memory_space<vmem>>, vector<4x128xf32>,
      %cst_32 = arith.constant 0.000000e+00 : f32
      %84 = vector.broadcast %cst_32 : f32 to vector<4x128xf32>
      %c0_33 = arith.constant 0 : index
      %c0_34 = arith.constant 0 : index
      %85 = vector.load %arg7[%c0_33, %c0_34] : memref<4x128xf32, #tpu.memory_space<vmem>>, vector<4x128xf32>
      tpu.vector_store %arg7[%c0_33, %c0_34], %84 {strides = array<i32>} : memref<4x128xf32, #tpu.memory_space<vmem>>, vector<4x128xf32>,
      %cst_35 = arith.constant 0.000000e+00 : f32
      %86 = vector.broadcast %cst_35 : f32 to vector<4x128xf32>
      %c0_36 = arith.constant 0 : index
      %c0_37 = arith.constant 0 : index
      %87 = vector.load %arg8[%c0_36, %c0_37] : memref<4x128xf32, #tpu.memory_space<vmem>>, vector<4x128xf32>
      tpu.vector_store %arg8[%c0_36, %c0_37], %86 {strides = array<i32>} : memref<4x128xf32, #tpu.memory_space<vmem>>, vector<4x128xf32>,
    } else {
    }
    %c0 = arith.constant 0 : index
    %c0_1 = arith.constant 0 : index
    %3 = vector.load %arg2[%c0, %c0_1] : memref<4x512xf32, #tpu.memory_space<vmem>>, vector<4x512xf32>
    %c0_2 = arith.constant 0 : index
    %c0_3 = arith.constant 0 : index
    %4 = vector.load %arg3[%c0_2, %c0_3] : memref<4x512xf32, #tpu.memory_space<vmem>>, vector<4x512xf32>
    %c4_i32 = arith.constant 4 : i32
    %5 = arith.muli %arg0, %c4_i32 : i32
    %6 = arith.addi %5, %arg1 : i32
    %c512_i32 = arith.constant 512 : i32
    %7 = arith.muli %6, %c512_i32 : i32
    %8 = tpu.iota {dimensions = array<i32: 1>} : vector<4x512xi32>
    %9 = vector.broadcast %7 : i32 to vector<4x512xi32>
    %10 = arith.addi %9, %8 : vector<4x512xi32>
    %c4000_i32 = arith.constant 4000 : i32
    %11 = vector.broadcast %c4000_i32 : i32 to vector<4x512xi32>
    %12 = arith.cmpi slt, %10, %11 : vector<4x512xi32>
    %cst = arith.constant 0.000000e+00 : f32
    %13 = vector.broadcast %cst : f32 to vector<4x512xf32>
    %14 = arith.select %12, %3, %13 : vector<4x512xi1>, vector<4x512xf32>
    %cst_4 = arith.constant 5.000000e-01 : f32
    %15 = vector.broadcast %cst_4 : f32 to vector<4x512xf32>
    %16 = arith.select %12, %4, %15 : vector<4x512xi1>, vector<4x512xf32>
    %cst_5 = arith.constant 0.000000e+00 : f32
    %17 = vector.broadcast %cst_5 : f32 to vector<4x512xf32>
    %18 = arith.maximumf %14, %17 : vector<4x512xf32>
    %19 = arith.mulf %14, %16 : vector<4x512xf32>
    %20 = arith.subf %18, %19 : vector<4x512xf32>
    %21 = math.absf %14 : vector<4x512xf32>
    %cst_6 = arith.constant 0.000000e+00 : f32
    %22 = vector.broadcast %cst_6 : f32 to vector<4x512xf32>
    %23 = arith.subf %22, %21 : vector<4x512xf32>
    %24 = math.exp %23 : vector<4x512xf32>
    %25 = math.log1p %24 : vector<4x512xf32>
    %26 = arith.addf %20, %25 : vector<4x512xf32>
    %cst_7 = arith.constant 1.000000e+00 : f32
    %27 = vector.broadcast %cst_7 : f32 to vector<4x512xf32>
    %28 = arith.cmpf oeq, %16, %27 : vector<4x512xf32>
    %29 = arith.extui %28 : vector<4x512xi1> to vector<4x512xi32>
    %30 = arith.sitofp %29 : vector<4x512xi32> to vector<4x512xf32>
    %cst_8 = arith.constant 0.000000e+00 : f32
    %31 = vector.broadcast %cst_8 : f32 to vector<4x512xf32>
    %32 = arith.cmpf oeq, %16, %31 : vector<4x512xf32>
    %33 = arith.extui %32 : vector<4x512xi1> to vector<4x512xi32>
    %34 = arith.sitofp %33 : vector<4x512xi32> to vector<4x512xf32>
    %c0_9 = arith.constant 0 : index
    %c0_10 = arith.constant 0 : index
    %35 = vector.load %arg5[%c0_9, %c0_10] : memref<4x128xf32, #tpu.memory_space<vmem>>, vector<4x128xf32>
    %36 = vector.extract_strided_slice %30 {offsets = [0, 0], sizes = [4, 128], strides = [1, 1]} : vector<4x512xf32> to vector<4x128xf32>
    %37 = vector.extract_strided_slice %30 {offsets = [0, 128], sizes = [4, 128], strides = [1, 1]} : vector<4x512xf32> to vector<4x128xf32>
    %38 = arith.addf %36, %37 : vector<4x128xf32>
    %39 = vector.extract_strided_slice %30 {offsets = [0, 256], sizes = [4, 128], strides = [1, 1]} : vector<4x512xf32> to vector<4x128xf32>
    %40 = arith.addf %38, %39 : vector<4x128xf32>
    %41 = vector.extract_strided_slice %30 {offsets = [0, 384], sizes = [4, 128], strides = [1, 1]} : vector<4x512xf32> to vector<4x128xf32>
    %42 = arith.addf %40, %41 : vector<4x128xf32>
    %43 = arith.addf %35, %42 : vector<4x128xf32>
    %c0_11 = arith.constant 0 : index
    %c0_12 = arith.constant 0 : index
    %44 = vector.load %arg5[%c0_11, %c0_12] : memref<4x128xf32, #tpu.memory_space<vmem>>, vector<4x128xf32>
    tpu.vector_store %arg5[%c0_11, %c0_12], %43 {strides = array<i32>} : memref<4x128xf32, #tpu.memory_space<vmem>>, vector<4x128xf32>,
    %c0_13 = arith.constant 0 : index
    %c0_14 = arith.constant 0 : index
    %45 = vector.load %arg6[%c0_13, %c0_14] : memref<4x128xf32, #tpu.memory_space<vmem>>, vector<4x128xf32>
    %46 = arith.mulf %26, %30 : vector<4x512xf32>
    %47 = vector.extract_strided_slice %46 {offsets = [0, 0], sizes = [4, 128], strides = [1, 1]} : vector<4x512xf32> to vector<4x128xf32>
    %48 = vector.extract_strided_slice %46 {offsets = [0, 128], sizes = [4, 128], strides = [1, 1]} : vector<4x512xf32> to vector<4x128xf32>
    %49 = arith.addf %47, %48 : vector<4x128xf32>
    %50 = vector.extract_strided_slice %46 {offsets = [0, 256], sizes = [4, 128], strides = [1, 1]} : vector<4x512xf32> to vector<4x128xf32>
    %51 = arith.addf %49, %50 : vector<4x128xf32>
    %52 = vector.extract_strided_slice %46 {offsets = [0, 384], sizes = [4, 128], strides = [1, 1]} : vector<4x512xf32> to vector<4x128xf32>
    %53 = arith.addf %51, %52 : vector<4x128xf32>
    %54 = arith.addf %45, %53 : vector<4x128xf32>
    %c0_15 = arith.constant 0 : index
    %c0_16 = arith.constant 0 : index
    %55 = vector.load %arg6[%c0_15, %c0_16] : memref<4x128xf32, #tpu.memory_space<vmem>>, vector<4x128xf32>
    tpu.vector_store %arg6[%c0_15, %c0_16], %54 {strides = array<i32>} : memref<4x128xf32, #tpu.memory_space<vmem>>, vector<4x128xf32>,
    %c0_17 = arith.constant 0 : index
    %c0_18 = arith.constant 0 : index
    %56 = vector.load %arg7[%c0_17, %c0_18] : memref<4x128xf32, #tpu.memory_space<vmem>>, vector<4x128xf32>
    %57 = vector.extract_strided_slice %34 {offsets = [0, 0], sizes = [4, 128], strides = [1, 1]} : vector<4x512xf32> to vector<4x128xf32>
    %58 = vector.extract_strided_slice %34 {offsets = [0, 128], sizes = [4, 128], strides = [1, 1]} : vector<4x512xf32> to vector<4x128xf32>
    %59 = arith.addf %57, %58 : vector<4x128xf32>
    %60 = vector.extract_strided_slice %34 {offsets = [0, 256], sizes = [4, 128], strides = [1, 1]} : vector<4x512xf32> to vector<4x128xf32>
    %61 = arith.addf %59, %60 : vector<4x128xf32>
    %62 = vector.extract_strided_slice %34 {offsets = [0, 384], sizes = [4, 128], strides = [1, 1]} : vector<4x512xf32> to vector<4x128xf32>
    %63 = arith.addf %61, %62 : vector<4x128xf32>
    %64 = arith.addf %56, %63 : vector<4x128xf32>
    %c0_19 = arith.constant 0 : index
    %c0_20 = arith.constant 0 : index
    %65 = vector.load %arg7[%c0_19, %c0_20] : memref<4x128xf32, #tpu.memory_space<vmem>>, vector<4x128xf32>
    tpu.vector_store %arg7[%c0_19, %c0_20], %64 {strides = array<i32>} : memref<4x128xf32, #tpu.memory_space<vmem>>, vector<4x128xf32>,
    %c0_21 = arith.constant 0 : index
    %c0_22 = arith.constant 0 : index
    %66 = vector.load %arg8[%c0_21, %c0_22] : memref<4x128xf32, #tpu.memory_space<vmem>>, vector<4x128xf32>
    %67 = arith.mulf %26, %34 : vector<4x512xf32>
    %68 = vector.extract_strided_slice %67 {offsets = [0, 0], sizes = [4, 128], strides = [1, 1]} : vector<4x512xf32> to vector<4x128xf32>
    %69 = vector.extract_strided_slice %67 {offsets = [0, 128], sizes = [4, 128], strides = [1, 1]} : vector<4x512xf32> to vector<4x128xf32>
    %70 = arith.addf %68, %69 : vector<4x128xf32>
    %71 = vector.extract_strided_slice %67 {offsets = [0, 256], sizes = [4, 128], strides = [1, 1]} : vector<4x512xf32> to vector<4x128xf32>
    %72 = arith.addf %70, %71 : vector<4x128xf32>
    %73 = vector.extract_strided_slice %67 {offsets = [0, 384], sizes = [4, 128], strides = [1, 1]} : vector<4x512xf32> to vector<4x128xf32>
    %74 = arith.addf %72, %73 : vector<4x128xf32>
    %75 = arith.addf %66, %74 : vector<4x128xf32>
    %c0_23 = arith.constant 0 : index
    %c0_24 = arith.constant 0 : index
    %76 = vector.load %arg8[%c0_23, %c0_24] : memref<4x128xf32, #tpu.memory_space<vmem>>, vector<4x128xf32>
    tpu.vector_store %arg8[%c0_23, %c0_24], %75 {strides = array<i32>} : memref<4x128xf32, #tpu.memory_space<vmem>>, vector<4x128xf32>,
    %c3_i32 = arith.constant 3 : i32
    %77 = arith.cmpi eq, %arg1, %c3_i32 : i32
    %78 = arith.extui %77 : i1 to i32
    %c0_i32_25 = arith.constant 0 : i32
    %79 = arith.cmpi ne, %78, %c0_i32_25 : i32
    scf.if %79 {
      %c0_26 = arith.constant 0 : index
      %c0_27 = arith.constant 0 : index
      %80 = vector.load %arg5[%c0_26, %c0_27] : memref<4x128xf32, #tpu.memory_space<vmem>>, vector<4x128xf32>
      %cst_28 = arith.constant dense<0.000000e+00> : vector<4xf32>
      %81 = vector.multi_reduction <add>, %80, %cst_28 [1] : vector<4x128xf32> to vector<4xf32>
      %82 = vector.shape_cast %81 : vector<4xf32> to vector<4x1xf32>
      %c0_29 = arith.constant 0 : index
      %c0_30 = arith.constant 0 : index
      %83 = vector.load %arg6[%c0_29, %c0_30] : memref<4x128xf32, #tpu.memory_space<vmem>>, vector<4x128xf32>
      %cst_31 = arith.constant dense<0.000000e+00> : vector<4xf32>
      %84 = vector.multi_reduction <add>, %83, %cst_31 [1] : vector<4x128xf32> to vector<4xf32>
      %85 = vector.shape_cast %84 : vector<4xf32> to vector<4x1xf32>
      %c0_32 = arith.constant 0 : index
      %c0_33 = arith.constant 0 : index
      %86 = vector.load %arg7[%c0_32, %c0_33] : memref<4x128xf32, #tpu.memory_space<vmem>>, vector<4x128xf32>
      %cst_34 = arith.constant dense<0.000000e+00> : vector<4xf32>
      %87 = vector.multi_reduction <add>, %86, %cst_34 [1] : vector<4x128xf32> to vector<4xf32>
      %88 = vector.shape_cast %87 : vector<4xf32> to vector<4x1xf32>
      %c0_35 = arith.constant 0 : index
      %c0_36 = arith.constant 0 : index
      %89 = vector.load %arg8[%c0_35, %c0_36] : memref<4x128xf32, #tpu.memory_space<vmem>>, vector<4x128xf32>
      %cst_37 = arith.constant dense<0.000000e+00> : vector<4xf32>
      %90 = vector.multi_reduction <add>, %89, %cst_37 [1] : vector<4x128xf32> to vector<4xf32>
      %91 = vector.shape_cast %90 : vector<4xf32> to vector<4x1xf32>
      %92 = tpu.concatenate %82, %85, %88, %91 in 1 : vector<4x1xf32>, vector<4x1xf32>, vector<4x1xf32>, vector<4x1xf32> -> vector<4x4xf32>
      %93 = vector.shape_cast %92 : vector<4x4xf32> to vector<1x4x4xf32>
      %c0_38 = arith.constant 0 : index
      %c0_39 = arith.constant 0 : index
      %c0_40 = arith.constant 0 : index
      %94 = vector.load %arg4[%c0_38, %c0_39, %c0_40] : memref<1x4x4xf32, #tpu.memory_space<vmem>>, vector<1x4x4xf32>
      tpu.vector_store %arg4[%c0_38, %c0_39, %c0_40], %93 {strides = array<i32>} : memref<1x4x4xf32, #tpu.memory_space<vmem>>, vector<1x4x4xf32>,
    } else {
    }
    return
  }
  func.func @transform_0(%arg0: i32, %arg1: i32) -> (i32, i32) {
    %c4_i32 = arith.constant 4 : i32
    %0 = arith.muli %arg0, %c4_i32 : i32
    %1 = arith.addi %0, %arg1 : i32
    %c0_i32 = arith.constant 0 : i32
    %c0_i32_0 = arith.constant 0 : i32
    return %c0_i32, %1 : i32, i32
  }
  func.func @transform_1(%arg0: i32, %arg1: i32) -> (i32, i32) {
    %c4_i32 = arith.constant 4 : i32
    %0 = arith.muli %arg0, %c4_i32 : i32
    %1 = arith.addi %0, %arg1 : i32
    %c0_i32 = arith.constant 0 : i32
    %c0_i32_0 = arith.constant 0 : i32
    return %c0_i32, %1 : i32, i32
  }
  func.func @transform_2(%arg0: i32, %arg1: i32) -> (i32, i32, i32) {
    %c0_i32 = arith.constant 0 : i32
    %c0_i32_0 = arith.constant 0 : i32
    %c0_i32_1 = arith.constant 0 : i32
    return %arg0, %c0_i32, %c0_i32_0 : i32, i32, i32
  }
}

</mosaic_0001>

<bundles_post_ra>
// kernel: bcfe_loss.1
= control target key start
LH: loop header
LB: loop body
LE: loop exit
PB: predicated region body
PF: predicated region fallthrough
CT: control target
= control target key end

     0   :  { %s633_s9 = smov 0   ;;  %s635_s10 = smov 0   ;;  %s781_s0 = inlined_call_operand.vmem [shape: f32[4,4000], index: 0, kind: input, shape index: {}]   ;;  %s782_s1 = inlined_call_operand.vmem [shape: f32[4,4000], index: 1, kind: input, shape index: {}]   ;;  %s783_s2 = inlined_call_operand.vmem [shape: f32[2,4,4], index: 2, kind: output, shape index: {}]  }
   0x1   :  { %s637_s11 = smov 0   ;;  %s639_s12 = smov 0  }
   0x2   :  { %s641_s13 = smov 0  }
   0x3 LB: > { %s21_s14 = sadd.s32 1, %s606_s11  ;;  %s24_s15 = sadd.s32 1, %s610_s12  ;;  %s614_s13 = sphi %s641_s13, %s12_s13   ;;  %s610_s12 = sphi %s639_s12, %s791_s12   ;;  %s606_s11 = sphi %s637_s11, %s790_s11   ;;  %s602_s10 = sphi %s635_s10, %s789_s10   ;;  %s598_s9 = sphi %s633_s9, %s788_s9  }
   0x4   : > { %p22_p0 = scmp.ge.s32.totalorder %s21_s14, 4  ;;  %p492_p1 = scmp.ge.s32.totalorder %s614_s13, 1 }
   0x5   : > { %p152_p2 = scmp.lt.s32.totalorder %s614_s13, 9 }
   0x6   : > { %s793_s14 = smov (%p22_p0, %s21_s14), 0  ;;  %s795_s15 = smov (!%p22_p0, %s24_s15), %s610_s12 }
   0x7   : > { %p153_p3 = pnand %p492_p1, %p152_p2  ;;  %p26_p4 = scmp.ge.s32.totalorder %s795_s15, 2 }
   0x8   : > { %s493_s16 = sshll.u32 (!%p153_p3), %s602_s10, 2  ;;  %p202_p5 = scmp.lt.s32.totalorder (!%p153_p3), %s602_s10, 1 }
   0x9   : > { %s797_s15 = smov (%p26_p4, %s795_s15), 0  ;;  %156 = sbr.rel (%p153_p3) target bundleno = 236 (0xec), region = 28 }
   0xa   : > { %s183_s17 = sadd.s32 (!%p153_p3), %s598_s9, %s493_s16  ;;  %p500_p7 = scmp.ne.s32.totalorder (!%p153_p3), %s598_s9, 0 }
   0xb   : > { %s494_s18 = sshll.u32 (!%p153_p3), %s183_s17, 2 }
   0xc   : > { %p185_p6 = scmp.lt.s32.totalorder (!%p153_p3), %s494_s18, 31 }
  0x10   : > { %s799_s10 = smov (!%p202_p5, %s602_s10), 1  ;;  %s801_s18 = smov (!%p185_p6, %s494_s18), 31 }
  0x11   : > { %s499_s19 = sshll.u32 %s799_s10, 2  ;;  %s495_s20 = sshll.u32 %s801_s18, 2  ;;  %v616_v0 = vmov (!%p500_p7), 0.0  }
  0x12   : > { %s669_s23 = scalar_lea.vmem %s783_s2, %s499_s19  ;;  %s188_s26 = scalar_lea.vmem %s781_s0, %s495_s20  ;;  %210 = vst [vmem:[#allocation2] sm:$0xf] (!%p500_p7), %v616_v0  ;;  %211 = vst [vmem:[#allocation3] sm:$0xf] (!%p500_p7), %v616_v0 }
  0x13   : > { %s198_s29 = scalar_lea.vmem %s782_s1, %s495_s20  ;;  %209 = sbr.rel (%p500_p7) target bundleno = 26 (0x1a), region = 32  ;;  %212 = vst [vmem:[#allocation4] sm:$0xf] (!%p500_p7), %v616_v0  ;;  %213 = vst [vmem:[#allocation5] sm:$0xf] (!%p500_p7), %v616_v0 }
  0x1a PF: > { %s502_s30 = sshll.u32 %s183_s17, 9  ;;  %v221_v1 = vlaneseq  ;;  %v214_v3 = vld [vmem:[%s188_s26] sm:$0xff]  ;;  %v215_v4 = vld [vmem:[%s188_s26 + $0x8] sm:$0xff]  ;;  %v617_v38 = vmov 0.0   ;;  %p511_p8 = scmp.ne.s32.totalorder %s598_s9, 3 }
  0x1b   : > { %v226_v2 = vstv %s502_s30  ;;  %v216_v6 = vld [vmem:[%s198_s29] sm:$0xff]  ;;  %v237_v11 = vcombine.high %v214_v3, %v214_v3  ;;  %v238_v12 = vcombine.high %v215_v4, %v215_v4  ;;  %v217_v16 = vld [vmem:[%s198_s29 + $0x8] sm:$0xff] }
  0x1c   : > { %v222_v5 = vand.u32 127, %v221_v1  ;;  %v247_v18 = vcombine.high %v216_v6, %v216_v6  ;;  %v248_v22 = vcombine.high %v217_v16, %v217_v16  ;;  %v347_v46 = vld [vmem:[#allocation2] sm:$0xf]  ;;  %v363_v55 = vld [vmem:[#allocation4] sm:$0xf] }
  0x1e   : > { %v223_v7 = vadd.s32 128, %v222_v5  ;;  %v224_v8 = vadd.s32 256, %v222_v5  ;;  %v225_v9 = vadd.s32 384, %v222_v5  ;;  %v227_v10 = vadd.s32 %v226_v2, %v222_v5 }
  0x20   : > { %v228_v13 = vadd.s32 %v226_v2, %v223_v7  ;;  %v229_v14 = vadd.s32 %v226_v2, %v224_v8  ;;  %v230_v15 = vadd.s32 %v226_v2, %v225_v9  ;;  %vm231_vm0 = vcmp.lt.s32.totalorder %v227_v10, 4000 }
  0x21   : > { %v678_v17 = vsel %vm231_vm0, %v214_v3, 0.0  ;;  %v688_v24 = vsel %vm231_vm0, %v216_v6, 0.5  ;;  %vm384_vm0 = vcmask (!%p511_p8), 1043456  }
  0x22   : > { %vm232_vm1 = vcmp.lt.s32.totalorder %v228_v13, 4000  ;;  %vm233_vm2 = vcmp.lt.s32.totalorder %v229_v14, 4000  ;;  %vm234_vm3 = vcmp.lt.s32.totalorder %v230_v15, 4000  ;;  %v267_v23 = vand.u32 2147483647, %v678_v17 }
  0x23   : > { %v680_v19 = vsel %vm232_vm1, %v237_v11, 0.0  ;;  %v682_v20 = vsel %vm233_vm2, %v215_v4, 0.0  ;;  %v685_v21 = vsel %vm234_vm3, %v238_v12, 0.0  ;;  %v690_v25 = vsel %vm232_vm1, %v247_v18, 0.5 }
  0x24   : > { %v268_v26 = vand.u32 2147483647, %v680_v19  ;;  %v269_v27 = vand.u32 2147483647, %v682_v20  ;;  %v270_v28 = vand.u32 2147483647, %v685_v21  ;;  %v259_v7 = vmul.f32 %v688_v24, %v678_v17 }
  0x25   : > { %v271_v29 = vsub.f32 0.0, %v267_v23  ;;  %vm323_vm4 = vcmp.eq.f32.partialorder %v688_v24, 1.0  ;;  %vm324_vm5 = vcmp.eq.f32.partialorder %v690_v25, 1.0  ;;  %v697_v30 = vsel %vm233_vm2, %v217_v16, 0.5 }
  0x26   : > { %v272_v31 = vsub.f32 0.0, %v268_v26  ;;  %v273_v32 = vsub.f32 0.0, %v269_v27  ;;  %v700_v33 = vsel %vm234_vm3, %v248_v22, 0.5  ;;  %v274_v34 = vsub.f32 0.0, %v270_v28 }
  0x27   : > { %v275_v35 = vmul.f32 1.442695, %v271_v29  ;;  %vm325_vm6 = vcmp.eq.f32.partialorder %v697_v30, 1.0  ;;  %v703_v39 = vsel %vm323_vm4, 1.0, %v617_v38  ;;  %v705_v40 = vsel %vm324_vm5, 1.0, %v617_v38 }
  0x28   : > { %v277_v36 = vmul.f32 1.442695, %v272_v31  ;;  %v279_v37 = vmul.f32 1.442695, %v273_v32  ;;  %v281_v41 = vmul.f32 1.442695, %v274_v34  ;;  %v348_v42 = vadd.f32 %v705_v40, %v703_v39 }
  0x29   : > { %560 = vpow2.f32 %v275_v35  ;;  %vm326_vm7 = vcmp.eq.f32.partialorder %v700_v33, 1.0  ;;  %v710_v43 = vsel %vm325_vm6, 1.0, %v617_v38  ;;  %vm335_vm8 = vcmp.eq.f32.partialorder %v688_v24, 0.0 }
  0x2a   : > { %562 = vpow2.f32 %v277_v36  ;;  %v349_v44 = vadd.f32 %v710_v43, %v348_v42  ;;  %v714_v45 = vsel %vm326_vm7, 1.0, %v617_v38  ;;  %vm336_vm9 = vcmp.eq.f32.partialorder %v690_v25, 0.0 }
  0x2b   : > { %564 = vpow2.f32 %v279_v37  ;;  %vm337_vm10 = vcmp.eq.f32.partialorder %v697_v30, 0.0  ;;  %v719_v48 = vsel %vm335_vm8, 1.0, %v617_v38  ;;  %v721_v49 = vsel %vm336_vm9, 1.0, %v617_v38 }
  0x2c   : > { %566 = vpow2.f32 %v281_v41  ;;  %v350_v47 = vadd.f32 %v714_v45, %v349_v44  ;;  %vm338_vm11 = vcmp.eq.f32.partialorder %v700_v33, 0.0  ;;  %v364_v51 = vadd.f32 %v721_v49, %v719_v48 }
  0x2d   : > { %v726_v52 = vsel %vm337_vm10, 1.0, %v617_v38  ;;  %v729_v54 = vsel %vm338_vm11, 1.0, %v617_v38  ;;  %v255_v8 = vmax.f32 %v678_v17, 0.0  ;;  %v260_v11 = vmul.f32 %v690_v25, %v680_v19 }
  0x2e   : > { %v351_v50 = vadd.f32 %v350_v47, %v347_v46  ;;  %v365_v53 = vadd.f32 %v726_v52, %v364_v51  ;;  %v256_v12 = vmax.f32 %v680_v19, 0.0  ;;  %v261_v15 = vmul.f32 %v697_v30, %v682_v20 }
  0x2f   : > { %v257_v16 = vmax.f32 %v682_v20, 0.0  ;;  %v262_v22 = vmul.f32 %v700_v33, %v685_v21  ;;  %v258_v17 = vmax.f32 %v685_v21, 0.0  ;;  %v263_v27 = vsub.f32 %v255_v8, %v259_v7 }
  0x30   : > { %352 = vst [vmem:[#allocation2] sm:$0xf] %v351_v50  ;;  %v366_v57 = vadd.f32 %v729_v54, %v365_v53  ;;  %v264_v30 = vsub.f32 %v256_v12, %v260_v11  ;;  %vm400_vm1 = vcmask (!%p511_p8), 7168   ;;  %vm402_vm2 = vcmask (!%p511_p8), 15360  }
  0x31   : > { %v265_v21 = vsub.f32 %v257_v16, %v261_v15  ;;  %v266_v41 = vsub.f32 %v258_v17, %v262_v22  ;;  %vm404_vm3 = vcmask (!%p511_p8), 23552   ;;  %vm406_vm4 = vcmask (!%p511_p8), 27648  }
  0x32   : > { %v367_v62 = vadd.f32 %v366_v57, %v363_v55 }
  0x33   : > { %v561_v56 = vpop.eup %560 }
  0x34   : > { %v563_v58 = vpop.eup %562  ;;  %v283_v59 = vadd.f32 1.0, %v561_v56  ;;  %v286_v1 = vmul.f32 -0.5, %v561_v56  ;;  %368 = vst [vmem:[#allocation4] sm:$0xf] %v367_v62  ;;  %v289_v9 = vand.u32 2147483647, %v561_v56 }
  0x35   : > { %v565_v60 = vpop.eup %564  ;;  %v292_v61 = vadd.f32 1.0, %v563_v58  ;;  %v295_v2 = vmul.f32 -0.5, %v563_v58  ;;  %v298_v13 = vand.u32 2147483647, %v563_v58 }
  0x36   : > { %v567_v63 = vpop.eup %566  ;;  %568 = vlog2.f32 %v283_v59  ;;  %v301_v0 = vadd.f32 1.0, %v565_v60  ;;  %v304_v4 = vmul.f32 -0.5, %v565_v60  ;;  %v287_v5 = vadd.f32 1.0, %v286_v1 }
  0x37   : > { %570 = vlog2.f32 %v292_v61  ;;  %v310_v3 = vadd.f32 1.0, %v567_v63  ;;  %v313_v6 = vmul.f32 -0.5, %v567_v63  ;;  %v296_v10 = vadd.f32 1.0, %v295_v2 }
  0x38   : > { %572 = vlog2.f32 %v301_v0  ;;  %v305_v14 = vadd.f32 1.0, %v304_v4  ;;  %v307_v18 = vand.u32 2147483647, %v565_v60  ;;  %v288_v23 = vmul.f32 %v561_v56, %v287_v5 }
  0x39   : > { %574 = vlog2.f32 %v310_v3  ;;  %v314_v24 = vadd.f32 1.0, %v313_v6  ;;  %vm744_vm12 = vcmp.lt.f32.partialorder %v289_v9, 0.0004427343  ;;  %v297_v19 = vmul.f32 %v563_v58, %v296_v10  ;;  %v353_v3 = vld [vmem:[#allocation3] sm:$0xf] }
  0x3a   : > { %v316_v28 = vand.u32 2147483647, %v567_v63  ;;  %vm748_vm13 = vcmp.lt.f32.partialorder %v298_v13, 0.0004427343  ;;  %v306_v32 = vmul.f32 %v565_v60, %v305_v14  ;;  %vm308_vm14 = vcmp.lt.f32.partialorder %v307_v18, 0.0004427343 }
  0x3b   : > { %v315_v37 = vmul.f32 %v567_v63, %v314_v24 }
  0x3c   : > { %vm317_vm15 = vcmp.lt.f32.partialorder %v316_v28, 0.0004427343 }
  0x40   : > { %v569_v26 = vpop.eup %568 }
  0x41   : > { %v571_v29 = vpop.eup %570  ;;  %v285_v31 = vmul.f32 0.6931472, %v569_v26 }
  0x42   : > { %v573_v33 = vpop.eup %572  ;;  %v294_v34 = vmul.f32 0.6931472, %v571_v29 }
  0x43   : > { %v291_v35 = vsel %vm744_vm12, %v288_v23, %v285_v31  ;;  %v303_v36 = vmul.f32 0.6931472, %v573_v33  ;;  %v575_v38 = vpop.eup %574 }
  0x44   : > { %v300_v42 = vsel %vm748_vm13, %v297_v19, %v294_v34  ;;  %v319_v44 = vadd.f32 %v291_v35, %v263_v27  ;;  %v312_v47 = vmul.f32 0.6931472, %v575_v38 }
  0x45   : > { %v309_v46 = vsel %vm308_vm14, %v306_v32, %v303_v36  ;;  %v320_v50 = vadd.f32 %v300_v42, %v264_v30 }
  0x46   : > { %v321_v51 = vadd.f32 %v309_v46, %v265_v21  ;;  %v354_v53 = vmul.f32 %v703_v39, %v319_v44  ;;  %v370_v55 = vmul.f32 %v719_v48, %v319_v44  ;;  %v318_v56 = vsel %vm317_vm15, %v315_v37, %v312_v47  ;;  %v369_v48 = vld [vmem:[#allocation5] sm:$0xf] }
  0x47   : > { %v355_v57 = vmul.f32 %v705_v40, %v320_v50  ;;  %v371_v58 = vmul.f32 %v721_v49, %v320_v50  ;;  %v322_v59 = vadd.f32 %v318_v56, %v266_v41  ;;  %v392_v49 = vld [vmem:[#allocation4] sm:$0xf] (!%p511_p8) }
  0x48   : > { %v356_v60 = vmul.f32 %v710_v43, %v321_v51  ;;  %v372_v61 = vmul.f32 %v726_v52, %v321_v51  ;;  %v383_v43 = vld [vmem:[#allocation2] sm:$0xf] (!%p511_p8) }
  0x49   : > { %v358_v62 = vadd.f32 %v355_v57, %v354_v53  ;;  %v374_v63 = vadd.f32 %v371_v58, %v370_v55  ;;  %v357_v0 = vmul.f32 %v714_v45, %v322_v59  ;;  %v373_v1 = vmul.f32 %v729_v54, %v322_v59 }
  0x4a   : > { %v385_v52 = vsel (!%p511_p8), %vm384_vm0, %v383_v43, 0.0  ;;  %v393_v45 = vsel (!%p511_p8), %vm384_vm0, %v392_v49, 0.0 }
  0x4b   : > { %v359_v2 = vadd.f32 %v358_v62, %v356_v60  ;;  %v375_v39 = vadd.f32 %v374_v63, %v372_v61  ;;  %382 = sbr.rel (%p511_p8) target bundleno = 236 (0xec), region = 36  ;;  %386 = vadd.xlane.f32.xlu0 (!%p511_p8), %v385_v52  ;;  %394 = vadd.xlane.f32.xlu1 (!%p511_p8), %v393_v45 }
  0x4d   : > { %v360_v4 = vadd.f32 %v359_v2, %v357_v0  ;;  %v376_v5 = vadd.f32 %v375_v39, %v373_v1 }
  0x4f   : > { %v361_v40 = vadd.f32 %v360_v4, %v353_v3  ;;  %v377_v6 = vadd.f32 %v376_v5, %v369_v48 }
  0x51   : > { %362 = vst [vmem:[#allocation3] sm:$0xf] %v361_v40  ;;  %378 = vst [vmem:[#allocation5] sm:$0xf] %v377_v6 }
  0x58   : > { %v388_v7 = vld [vmem:[#allocation3] sm:$0xf]  ;;  %v396_v54 = vld [vmem:[#allocation5] sm:$0xf] }
  0x59   : > { %v389_v8 = vsel %vm384_vm0, %v388_v7, 0.0  ;;  %v397_v9 = vsel %vm384_vm0, %v396_v54, 0.0 }
  0x5a   : > { %390 = vadd.xlane.f32.xlu0 %v389_v8  ;;  %398 = vadd.xlane.f32.xlu1 %v397_v9 }
  0xd8   : > { %v387_v10 = vpop.xlane.xlu0 %386  ;;  %v395_v11 = vpop.xlane.xlu1 %394 }
  0xe7   : > { %v391_v12 = vpop.xlane.xlu0 %390  ;;  %v399_v13 = vpop.xlane.xlu1 %398 }
  0xe8   : > { %v401_v14 = vsel %vm400_vm1, %v387_v10, %v391_v12 }
  0xe9   : > { %v403_v15 = vsel %vm402_vm2, %v401_v14, %v395_v11 }
  0xea   : > { %v405_v16 = vsel %vm404_vm3, %v403_v15, %v399_v13 }
  0xeb   : > { %407 = vst.msk [vmem:[%s669_s23] sm:$0xf] %vm406_vm4, %v405_v16 }
  0xec PF: > { %s12_s13 = sadd.s32 1, %s614_s13   ;;  %s788_s9 = smov %s606_s11 }
  0xed   : > { %p9_p9 = scmp.ge.s32.totalorder %s12_s13, 10   ;;  %s789_s10 = smov %s610_s12 }
  0xee   : > { %s790_s11 = smov %s793_s14  ;;  %s791_s12 = smov %s797_s15 }
  0xef   :  { %11 = sbr.rel (!%p9_p9) target bundleno = 3 (0x3), region = 69 }

</bundles_post_ra>
